<compile_context>
chip_gen: v5e
topology: v5e:2x2
jax: 0.10.0
libtpu: 0.0.40
codegen_flags: <defaults>
</compile_context>

<pallas_src>
import functools

import jax
import jax.numpy as jnp
from jax import lax
from jax.experimental import pallas as pl
from jax.experimental.pallas import tpu as pltpu


# --------------------------------------------------------------------------- #
# The single fused kernel. grid = (Ltot,), everything VMEM-resident.
# --------------------------------------------------------------------------- #
def _angel_kernel(nid_ref, gid_ref, sel_ref, w1_ref, w2_ref, aggw_ref, bias_ref,
                  wn_ref, wf_ref, cb_ref, cw2_ref, out_ref, acc_ref,
                  *, B, Rm_pad, kmax, V, E, P):
    f32, bf16 = jnp.float32, jnp.bfloat16
    l = pl.program_id(0)
    L = pl.num_programs(0)

    gid = gid_ref[l]                       # (Rall, kmax) int32 (sentinel -1 = padding)
    Rall = gid.shape[0]
    KV2 = 2 * kmax * V

    # One-hot over BOTH weight blocks (msg rows hit cols [0,kmax*V), neighbor
    # rows hit cols [kmax*V, 2*kmax*V) — offsets were folded into gid).
    iota = lax.broadcasted_iota(jnp.int32, (Rall, KV2), 1)       # hoisted, built once
    oh = gid[:, 0:1] == iota
    for j in range(1, kmax):
        oh = jnp.logical_or(oh, gid[:, j:j + 1] == iota)
    onehot = oh.astype(bf16)

    w1 = w1_ref[l]                         # (2*kmax*V, P) bf16
    w2 = w2_ref[l]                         # (2*P, E)      bf16
    bias = bias_ref[l]                     # (5, SLAB)     f32

    # Layer 1 for message-pass AND neighbor-pass MLPs in ONE matmul.
    h = jnp.dot(onehot, w1, preferred_element_type=f32)          # (Rall, P)
    hm = jnp.maximum(h[:Rm_pad] + bias[0:1, :P], 0.0)            # msg rows
    hn = jnp.maximum(h[Rm_pad:] + bias[1:2, :P], 0.0)            # neighbor rows

    # Layer 2 (separate weights per MLP).
    ym = jnp.maximum(jnp.dot(hm.astype(bf16), w2[:P],
                             preferred_element_type=f32) + bias[2:3, :E], 0.0)
    yn = jnp.maximum(jnp.dot(hn.astype(bf16), w2[P:],
                             preferred_element_type=f32) + bias[3:4, :E], 0.0)
    x = jnp.concatenate([ym, yn], axis=0).astype(bf16)            # (Rall, E)

    # Mean / signed-mean / masked-mean pooling as bf16 selector matmuls.
    sel = sel_ref[l]                        # (3, B, Rall) bf16
    pos = jnp.dot(sel[0], x, preferred_element_type=f32)          # (B, E)
    neg = jnp.dot(sel[1], x, preferred_element_type=f32)          # sign folded in
    nb = jnp.dot(sel[2], x, preferred_element_type=f32)           # mask & 1/cnt folded
    slab_in = jnp.concatenate([pos, neg, nb], axis=1).astype(bf16)  # (B, 3E)

    # Fused aggregation heads: block-diagonal (3E, SLAB) -> lane-dense slab.
    aggw = aggw_ref[l]                      # (3E, SLAB) bf16
    slab = jnp.maximum(jnp.dot(slab_in, aggw, preferred_element_type=f32)
                       + bias[4:5, :], 0.0)                       # (B, SLAB) f32

    # Combine accumulator lives in VMEM scratch across the layer grid.
    @pl.when(l == 0)
    def _():
        nid = nid_ref[...]                  # (B, 1) int32
        noh = (nid == lax.broadcasted_iota(jnp.int32, (B, V), 1)).astype(bf16)
        acc_ref[...] = jnp.dot(noh, wn_ref[...], preferred_element_type=f32)

    acc_ref[...] += jnp.dot(slab.astype(bf16), wf_ref[l],
                            preferred_element_type=f32)           # (B, C)

    @pl.when(l == L - 1)
    def _():
        cb = cb_ref[...]                    # (2, C) f32 : [b1 ; b2 (padded)]
        hcmb = jnp.maximum(acc_ref[...] + cb[0:1, :], 0.0)
        y = jnp.dot(hcmb.astype(bf16), cw2_ref[...], preferred_element_type=f32)
        out_ref[...] = y + cb[1:2, :y.shape[1]]


# --------------------------------------------------------------------------- #
# Parameter construction (deterministic, synthetic, canonical layout)
# --------------------------------------------------------------------------- #
def _dense(key, shape):
    return jax.random.normal(key, shape, dtype=jnp.float32) * 0.1


def init_angel_params(key, cfg):
    E = cfg["embed_size"]
    keys = iter(jax.random.split(key, 256))
    params = {"embedding": _dense(next(keys), (cfg["nodetype_num"], E)), "tri": [], "sq": []}

    def mp_params(k_nodes):
        return (_dense(next(keys), (k_nodes * E, cfg["pass_embed"])),
                _dense(next(keys), (1, cfg["pass_embed"])),
                _dense(next(keys), (cfg["pass_embed"], E)),
                _dense(next(keys), (1, E)))

    def agg_params():
        return (_dense(next(keys), (E, E)), _dense(next(keys), (1, E)))

    for _ in range(cfg["trianglelogic_num"]):
        params["tri"].append({"mpass": mp_params(3), "nbpass": mp_params(3),
                              "posagg": agg_params(), "negagg": agg_params(),
                              "nbagg": agg_params()})
    for _ in range(cfg["squarelogic_num"]):
        params["sq"].append({"mpass": mp_params(4), "nbpass": mp_params(4),
                             "posagg": agg_params(), "negagg": agg_params(),
                             "nbagg": agg_params()})

    d_in = E * (1
                + (3 * cfg["trianglelogic_num"] if cfg["triangle_signal"] else 0)
                + (3 * cfg["squarelogic_num"] if cfg["square_signal"] else 0))
    params["combine"] = (_dense(next(keys), (d_in, cfg["combine_embed"])),
                         _dense(next(keys), (1, cfg["combine_embed"])),
                         _dense(next(keys), (cfg["combine_embed"], cfg["label_num"])),
                         _dense(next(keys), (1, cfg["label_num"])))
    return params


def prepare_params(params, cfg):
    """One-time weight prep: fold the embedding into layer 1, pad triangle k=3 to
    kmax, pack per-layer weights/biases into a handful of (Ltot, ...) arrays,
    build the block-diagonal agg weights (128-lane block per head) and the
    slab-permuted combine-W1 blocks.  Matmul weights bf16, biases f32."""
    E, P, C = cfg["embed_size"], cfg["pass_embed"], cfg["combine_embed"]
    V, Lnum = cfg["nodetype_num"], cfg["label_num"]
    emb = params["embedding"]
    bf16 = jnp.bfloat16
    Eb = ((E + 127) // 128) * 128          # 128-lane block per aggregation head
    SLAB = 3 * Eb

    fams = []
    if cfg["triangle_signal"]:
        fams.append(("tri", 3, cfg["trianglelogic_num"]))
    if cfg["square_signal"]:
        fams.append(("sq", 4, cfg["squarelogic_num"]))
    kmax = max([k for _, k, _ in fams], default=3)

    def fold(w1, k):
        blocks = [emb @ w1[j * E:(j + 1) * E] for j in range(k)]
        blocks += [jnp.zeros((V, P), jnp.float32)] * (kmax - k)
        return jnp.concatenate(blocks, axis=0)                    # (kmax*V, P)

    w1_l, w2_l, aggw_l, bias_l = [], [], [], []
    for name, k, _ in fams:
        for p in params[name]:
            mw1, mb1, mw2, mb2 = p["mpass"]
            nw1, nb1, nw2, nb2 = p["nbpass"]
            w1_l.append(jnp.concatenate([fold(mw1, k), fold(nw1, k)], axis=0))
            w2_l.append(jnp.concatenate([mw2, nw2], axis=0))
            (pw, pb), (gw, gb), (qw, qb) = p["posagg"], p["negagg"], p["nbagg"]
            a = jnp.zeros((3 * E, SLAB), jnp.float32)
            a = (a.at[0:E, 0:E].set(pw)
                 .at[E:2 * E, Eb:Eb + E].set(gw)
                 .at[2 * E:3 * E, 2 * Eb:2 * Eb + E].set(qw))
            aggw_l.append(a)
            b = jnp.zeros((5, SLAB), jnp.float32)
            b = (b.at[0, :P].set(mb1[0]).at[1, :P].set(nb1[0])
                 .at[2, :E].set(mb2[0]).at[3, :E].set(nb2[0])
                 .at[4, 0:E].set(pb[0]).at[4, Eb:Eb + E].set(gb[0])
                 .at[4, 2 * Eb:2 * Eb + E].set(qb[0]))
            bias_l.append(b)

    # Combine weights, permuted to per-layer slab blocks [pos | neg | nb].
    w1c, b1c, w2c, b2c = params["combine"]
    wn = emb @ w1c[0:E]
    wf_l, off = [], E
    for name, k, L in fams:
        pn = w1c[off:off + 2 * L * E]; off += 2 * L * E
        nbw = w1c[off:off + L * E]; off += L * E
        for l in range(L):
            wfl = jnp.zeros((SLAB, C), jnp.float32)
            wfl = (wfl.at[0:E].set(pn[2 * l * E:(2 * l + 1) * E])
                   .at[Eb:Eb + E].set(pn[(2 * l + 1) * E:(2 * l + 2) * E])
                   .at[2 * Eb:2 * Eb + E].set(nbw[l * E:(l + 1) * E]))
            wf_l.append(wfl)

    if not w1_l:                            # no families active: one dummy zero layer
        w1_l = [jnp.zeros((2 * kmax * V, P), jnp.float32)]
        w2_l = [jnp.zeros((2 * P, E), jnp.float32)]
        aggw_l = [jnp.zeros((3 * E, SLAB), jnp.float32)]
        bias_l = [jnp.zeros((5, SLAB), jnp.float32)]
        wf_l = [jnp.zeros((SLAB, C), jnp.float32)]

    cb = jnp.zeros((2, C), jnp.float32).at[0].set(b1c[0]).at[1, :Lnum].set(b2c[0])

    return dict(kmax=kmax, Eb=Eb, SLAB=SLAB,
                w1=jnp.stack(w1_l).astype(bf16),
                w2=jnp.stack(w2_l).astype(bf16),
                aggw=jnp.stack(aggw_l).astype(bf16),
                bias=jnp.stack(bias_l),
                wn=wn.astype(bf16),
                wf=jnp.stack(wf_l).astype(bf16),
                cb=cb,
                cw2=w2c.astype(bf16))


# --------------------------------------------------------------------------- #
# Wrapper-side layout plumbing (per-call, data dependent, all tiny arrays).
# --------------------------------------------------------------------------- #
def _family_gid(graphlet, nographlet, neighbor, k, kmax, V, Gm_max, Gn_max,
                Rm_pad, Rn_pad):
    B, L = graphlet.shape[0], graphlet.shape[1]
    joff = jnp.arange(kmax, dtype=jnp.int32) * V

    def expand(x, Gmax, off):
        G = x.shape[2]
        x = jnp.transpose(x, (1, 0, 2, 3)).astype(jnp.int32)       # (L,B,G,k)
        g = x + joff[:k][None, None, None, :] + off
        if kmax > k:
            g = jnp.concatenate([g, jnp.full((L, B, G, kmax - k), -1, jnp.int32)], -1)
        if Gmax > G:
            g = jnp.concatenate([g, jnp.full((L, B, Gmax - G, kmax), -1, jnp.int32)], 2)
        return g.reshape(L, B * Gmax, kmax)

    gm = expand(graphlet, Gm_max, 0)
    gng = expand(nographlet, Gm_max, 0)
    nbg = expand(neighbor, Gn_max, kmax * V)
    rows_m = jnp.concatenate([gm, gng], axis=1)
    padm = Rm_pad - rows_m.shape[1]
    if padm:
        rows_m = jnp.concatenate(
            [rows_m, jnp.full((L, padm, kmax), -1, jnp.int32)], axis=1)
    padn = Rn_pad - nbg.shape[1]
    if padn:
        nbg = jnp.concatenate([nbg, jnp.full((L, padn, kmax), -1, jnp.int32)], axis=1)
    return jnp.concatenate([rows_m, nbg], axis=1)                  # (L, Rall, kmax)


def _family_sel(mask, G, Gn, B, Gm_max, Gn_max, Rm_pad, Rn_pad, Rall):
    L = mask.shape[1]
    half = B * Gm_max
    cpos = jnp.arange(Rm_pad)[None, :]
    b_idx = jnp.arange(B)[:, None]
    in_pos = (cpos < half) & ((cpos // Gm_max) == b_idx) & ((cpos % Gm_max) < G)
    sel_pos = jnp.where(in_pos, 1.0 / G, 0.0)                      # mean, sign +1
    cneg = cpos - half
    in_neg = ((cpos >= half) & (cpos < 2 * half)
              & ((cneg // Gm_max) == b_idx) & ((cneg % Gm_max) < G))
    sel_neg = jnp.where(in_neg, -1.0 / G, 0.0)                     # mean, sign -1
    tail = jnp.zeros((B, Rall - Rm_pad), jnp.float32)
    sel_pos = jnp.broadcast_to(jnp.concatenate([sel_pos, tail], 1), (L, B, Rall))
    sel_neg = jnp.broadcast_to(jnp.concatenate([sel_neg, tail], 1), (L, B, Rall))

    m = jnp.transpose(mask[..., 0], (1, 0, 2)).astype(jnp.float32)  # (L, B, Gn)
    cnt = jnp.maximum(jnp.sum(m, axis=-1, keepdims=True), 1.0)
    w = m / cnt
    if Gn_max > Gn:
        w = jnp.concatenate([w, jnp.zeros((L, B, Gn_max - Gn), jnp.float32)], -1)
    blocks = jnp.eye(B, dtype=jnp.float32)[None, :, :, None] * w[:, :, None, :]
    nbpart = blocks.reshape(L, B, B * Gn_max)
    padn = Rn_pad - B * Gn_max
    if padn:
        nbpart = jnp.concatenate([nbpart, jnp.zeros((L, B, padn), jnp.float32)], -1)
    sel_nb = jnp.concatenate([jnp.zeros((L, B, Rm_pad), jnp.float32), nbpart], -1)
    return jnp.stack([sel_pos, sel_neg, sel_nb], axis=1)           # (L, 3, B, Rall)


# --------------------------------------------------------------------------- #
# Angel forward: ONE pallas_call for the whole network.
# Note (v7x): the single "arbitrary" layer axis does not shard across the two
# TensorCores; at these sizes the saved launches/HBM round-trips dominate.
# --------------------------------------------------------------------------- #
def angel_forward(prep, cfg, node_id, triangle, notriangle, square, nosquare,
                  triangle_neighbor, triangle_mask, square_neighbor, square_mask):
    V, E, P, C = cfg["nodetype_num"], cfg["embed_size"], cfg["pass_embed"], cfg["combine_embed"]
    B = node_id.shape[0]
    kmax = prep["kmax"]

    fams = []
    if cfg["triangle_signal"]:
        fams.append((triangle, notriangle, triangle_neighbor, triangle_mask, 3))
    if cfg["square_signal"]:
        fams.append((square, nosquare, square_neighbor, square_mask, 4))

    Gm_max = max((f[0].shape[2] for f in fams), default=1)
    Gn_max = max((f[2].shape[2] for f in fams), default=1)
    rup = lambda n, m: ((n + m - 1) // m) * m
    Rm_pad = rup(2 * B * Gm_max, 8)
    Rn_pad = rup(B * Gn_max, 8)
    Rall = Rm_pad + Rn_pad

    gids, sels = [], []
    for g, ng, nbh, msk, k in fams:
        gids.append(_family_gid(g, ng, nbh, k, kmax, V, Gm_max, Gn_max, Rm_pad, Rn_pad))
        sels.append(_family_sel(msk, g.shape[2], nbh.shape[2], B,
                                Gm_max, Gn_max, Rm_pad, Rn_pad, Rall))
    if fams:
        gid = jnp.concatenate(gids, axis=0)
        sel = jnp.concatenate(sels, axis=0).astype(jnp.bfloat16)
    else:
        gid = jnp.full((1, Rall, kmax), -1, jnp.int32)
        sel = jnp.zeros((1, 3, B, Rall), jnp.bfloat16)

    Ltot = gid.shape[0]
    nid = node_id.reshape(B, 1).astype(jnp.int32)
    label_num = cfg["label_num"]

    kern = functools.partial(_angel_kernel, B=B, Rm_pad=Rm_pad, kmax=kmax,
                             V=V, E=E, P=P)

    def full_spec(arr):
        n = arr.ndim
        return pl.BlockSpec(arr.shape, lambda l, n=n: (0,) * n)    # resident, 1 DMA

    args = (nid, gid, sel, prep["w1"], prep["w2"], prep["aggw"], prep["bias"],
            prep["wn"], prep["wf"], prep["cb"], prep["cw2"])
    return pl.pallas_call(
        kern,
        out_shape=jax.ShapeDtypeStruct((B, label_num), jnp.float32),
        grid=(Ltot,),
        in_specs=[full_spec(a) for a in args],
        out_specs=pl.BlockSpec((B, label_num), lambda l: (0, 0)),
        scratch_shapes=[pltpu.VMEM((B, C), jnp.float32)],
        compiler_params=pltpu.CompilerParams(dimension_semantics=("arbitrary",)),
    )(*args)


# --------------------------------------------------------------------------- #
# Driver
# --------------------------------------------------------------------------- #
if __name__ == "__main__":
    cfg = dict(
        nodetype_num=16,
        embed_size=32,
        triangle_signal=True,
        square_signal=True,
        trianglelogic_num=2,
        squarelogic_num=2,
        triangle_num=4,
        square_num=4,
        triangleneighbor_num=4,
        squareneighbor_num=4,
        pass_embed=32,
        combine_embed=32,
        label_num=1,
    )
    B = 2

    key = jax.random.PRNGKey(0)
    k_param, k_ids, k_mask = jax.random.split(key, 3)
    params = init_angel_params(k_param, cfg)
    prep = prepare_params(params, cfg)

    ks = jax.random.split(k_ids, 8)
    V = cfg["nodetype_num"]
    node_id = jax.random.randint(ks[0], (B,), 0, V)
    triangle = jax.random.randint(ks[1], (B, cfg["trianglelogic_num"], cfg["triangle_num"], 3), 0, V)
    notriangle = jax.random.randint(ks[2], (B, cfg["trianglelogic_num"], cfg["triangle_num"], 3), 0, V)
    triangle_neighbor = jax.random.randint(
        ks[3], (B, cfg["trianglelogic_num"], cfg["triangleneighbor_num"], 3), 0, V)
    square = jax.random.randint(ks[4], (B, cfg["squarelogic_num"], cfg["square_num"], 4), 0, V)
    nosquare = jax.random.randint(ks[5], (B, cfg["squarelogic_num"], cfg["square_num"], 4), 0, V)
    square_neighbor = jax.random.randint(
        ks[6], (B, cfg["squarelogic_num"], cfg["squareneighbor_num"], 4), 0, V)
    km1, km2 = jax.random.split(k_mask)
    triangle_mask = (jax.random.uniform(
        km1, (B, cfg["trianglelogic_num"], cfg["triangleneighbor_num"], 1)) > 0.3).astype(jnp.float32)
    square_mask = (jax.random.uniform(
        km2, (B, cfg["squarelogic_num"], cfg["squareneighbor_num"], 1)) > 0.3).astype(jnp.float32)

    fwd = jax.jit(functools.partial(angel_forward, prep, cfg))
    out = fwd(node_id, triangle, notriangle, square, nosquare,
              triangle_neighbor, triangle_mask, square_neighbor, square_mask)
    out = jax.block_until_ready(out)
    assert out.shape == (B, cfg["label_num"]), out.shape
    assert bool(jnp.all(jnp.isfinite(out)))
    print("KERNEL_OK")
</pallas_src>

<mosaic_0001>
module attributes {stable_mosaic.version = 11 : i64} {
  func.func @_angel_kernel(%arg0: i32, %arg1: memref<2x1xi32, #tpu.memory_space<vmem>>, %arg2: memref<4x24x4xi32, #tpu.memory_space<vmem>>, %arg3: memref<4x3x2x24xbf16, #tpu.memory_space<vmem>>, %arg4: memref<4x128x32xbf16, #tpu.memory_space<vmem>>, %arg5: memref<4x64x32xbf16, #tpu.memory_space<vmem>>, %arg6: memref<4x96x384xbf16, #tpu.memory_space<vmem>>, %arg7: memref<4x5x384xf32, #tpu.memory_space<vmem>>, %arg8: memref<16x32xbf16, #tpu.memory_space<vmem>>, %arg9: memref<4x384x32xbf16, #tpu.memory_space<vmem>>, %arg10: memref<2x32xf32, #tpu.memory_space<vmem>>, %arg11: memref<32x1xbf16, #tpu.memory_space<vmem>>, %arg12: memref<2x1xf32, #tpu.memory_space<vmem>>, %arg13: memref<2x32xf32, #tpu.memory_space<vmem>>) attributes {dimension_semantics = [#tpu.dimension_semantics<arbitrary>], iteration_bounds = array<i64: 4>, scalar_prefetch = 0 : i64, scratch_operands = 1 : i64, tpu.core_type = #tpu.core_type<tc>, window_params = [{pipeline_mode = #tpu.pipeline_mode<synchronous>, transform_indices = @transform_0, window_bounds = array<i64: 2, 1>}, {pipeline_mode = #tpu.pipeline_mode<synchronous>, transform_indices = @transform_1, window_bounds = array<i64: 4, 24, 4>}, {pipeline_mode = #tpu.pipeline_mode<synchronous>, transform_indices = @transform_2, window_bounds = array<i64: 4, 3, 2, 24>}, {pipeline_mode = #tpu.pipeline_mode<synchronous>, transform_indices = @transform_3, window_bounds = array<i64: 4, 128, 32>}, {pipeline_mode = #tpu.pipeline_mode<synchronous>, transform_indices = @transform_4, window_bounds = array<i64: 4, 64, 32>}, {pipeline_mode = #tpu.pipeline_mode<synchronous>, transform_indices = @transform_5, window_bounds = array<i64: 4, 96, 384>}, {pipeline_mode = #tpu.pipeline_mode<synchronous>, transform_indices = @transform_6, window_bounds = array<i64: 4, 5, 384>}, {pipeline_mode = #tpu.pipeline_mode<synchronous>, transform_indices = @transform_7, window_bounds = array<i64: 16, 32>}, {pipeline_mode = #tpu.pipeline_mode<synchronous>, transform_indices = @transform_8, window_bounds = array<i64: 4, 384, 32>}, {pipeline_mode = #tpu.pipeline_mode<synchronous>, transform_indices = @transform_9, window_bounds = array<i64: 2, 32>}, {pipeline_mode = #tpu.pipeline_mode<synchronous>, transform_indices = @transform_10, window_bounds = array<i64: 32, 1>}, {pipeline_mode = #tpu.pipeline_mode<synchronous>, transform_indices = @transform_11, window_bounds = array<i64: 2, 1>}]} {
    %0 = arith.index_cast %arg0 : i32 to index
    %c0 = arith.constant 0 : index
    %c0_0 = arith.constant 0 : index
    %1 = vector.load %arg2[%0, %c0, %c0_0] : memref<4x24x4xi32, #tpu.memory_space<vmem>>, vector<1x24x4xi32>
    %2 = vector.shape_cast %1 : vector<1x24x4xi32> to vector<24x4xi32>
    %3 = tpu.iota {dimensions = array<i32: 1>} : vector<24x128xi32>
    %4 = vector.extract_strided_slice %2 {offsets = [0, 0], sizes = [24, 1], strides = [1, 1]} : vector<24x4xi32> to vector<24x1xi32>
    %5 = vector.broadcast %4 : vector<24x1xi32> to vector<24x128xi32>
    %6 = arith.cmpi eq, %5, %3 : vector<24x128xi32>
    %7 = vector.extract_strided_slice %2 {offsets = [0, 1], sizes = [24, 1], strides = [1, 1]} : vector<24x4xi32> to vector<24x1xi32>
    %8 = vector.broadcast %7 : vector<24x1xi32> to vector<24x128xi32>
    %9 = arith.cmpi eq, %8, %3 : vector<24x128xi32>
    %10 = arith.ori %6, %9 : vector<24x128xi1>
    %11 = vector.extract_strided_slice %2 {offsets = [0, 2], sizes = [24, 1], strides = [1, 1]} : vector<24x4xi32> to vector<24x1xi32>
    %12 = vector.broadcast %11 : vector<24x1xi32> to vector<24x128xi32>
    %13 = arith.cmpi eq, %12, %3 : vector<24x128xi32>
    %14 = arith.ori %10, %13 : vector<24x128xi1>
    %15 = vector.extract_strided_slice %2 {offsets = [0, 3], sizes = [24, 1], strides = [1, 1]} : vector<24x4xi32> to vector<24x1xi32>
    %16 = vector.broadcast %15 : vector<24x1xi32> to vector<24x128xi32>
    %17 = arith.cmpi eq, %16, %3 : vector<24x128xi32>
    %18 = arith.ori %14, %17 : vector<24x128xi1>
    %19 = arith.extui %18 : vector<24x128xi1> to vector<24x128xi32>
    %20 = arith.sitofp %19 : vector<24x128xi32> to vector<24x128xf32>
    %21 = arith.truncf %20 : vector<24x128xf32> to vector<24x128xbf16>
    %22 = arith.index_cast %arg0 : i32 to index
    %c0_1 = arith.constant 0 : index
    %c0_2 = arith.constant 0 : index
    %23 = vector.load %arg4[%22, %c0_1, %c0_2] : memref<4x128x32xbf16, #tpu.memory_space<vmem>>, vector<1x128x32xbf16>
    %24 = vector.shape_cast %23 : vector<1x128x32xbf16> to vector<128x32xbf16>
    %25 = arith.index_cast %arg0 : i32 to index
    %c0_3 = arith.constant 0 : index
    %c0_4 = arith.constant 0 : index
    %26 = vector.load %arg5[%25, %c0_3, %c0_4] : memref<4x64x32xbf16, #tpu.memory_space<vmem>>, vector<1x64x32xbf16>
    %27 = vector.shape_cast %26 : vector<1x64x32xbf16> to vector<64x32xbf16>
    %28 = arith.index_cast %arg0 : i32 to index
    %c0_5 = arith.constant 0 : index
    %c0_6 = arith.constant 0 : index
    %29 = vector.load %arg7[%28, %c0_5, %c0_6] : memref<4x5x384xf32, #tpu.memory_space<vmem>>, vector<1x5x384xf32>
    %30 = vector.shape_cast %29 : vector<1x5x384xf32> to vector<5x384xf32>
    %cst = arith.constant dense<0.000000e+00> : vector<24x32xf32>
    %31 = tpu.matmul %21, %24, %cst {dimension_numbers = #tpu.dot_dimension_numbers<[1], [0], [0], [1], [0, 0, 1, 1], [], []>} : vector<24x128xbf16>, vector<128x32xbf16>, vector<24x32xf32> -> vector<24x32xf32>
    %32 = vector.extract_strided_slice %31 {offsets = [0, 0], sizes = [16, 32], strides = [1, 1]} : vector<24x32xf32> to vector<16x32xf32>
    %33 = vector.extract_strided_slice %30 {offsets = [0, 0], sizes = [1, 32], strides = [1, 1]} : vector<5x384xf32> to vector<1x32xf32>
    %34 = vector.broadcast %33 : vector<1x32xf32> to vector<16x32xf32>
    %35 = arith.addf %32, %34 : vector<16x32xf32>
    %cst_7 = arith.constant 0.000000e+00 : f32
    %36 = vector.broadcast %cst_7 : f32 to vector<16x32xf32>
    %37 = arith.maximumf %35, %36 : vector<16x32xf32>
    %38 = vector.extract_strided_slice %31 {offsets = [16, 0], sizes = [8, 32], strides = [1, 1]} : vector<24x32xf32> to vector<8x32xf32>
    %39 = vector.extract_strided_slice %30 {offsets = [1, 0], sizes = [1, 32], strides = [1, 1]} : vector<5x384xf32> to vector<1x32xf32>
    %40 = vector.broadcast %39 : vector<1x32xf32> to vector<8x32xf32>
    %41 = arith.addf %38, %40 : vector<8x32xf32>
    %cst_8 = arith.constant 0.000000e+00 : f32
    %42 = vector.broadcast %cst_8 : f32 to vector<8x32xf32>
    %43 = arith.maximumf %41, %42 : vector<8x32xf32>
    %44 = arith.truncf %37 : vector<16x32xf32> to vector<16x32xbf16>
    %45 = vector.extract_strided_slice %27 {offsets = [0, 0], sizes = [32, 32], strides = [1, 1]} : vector<64x32xbf16> to vector<32x32xbf16>
    %cst_9 = arith.constant dense<0.000000e+00> : vector<16x32xf32>
    %46 = tpu.matmul %44, %45, %cst_9 {dimension_numbers = #tpu.dot_dimension_numbers<[1], [0], [0], [1], [0, 0, 1, 1], [], []>} : vector<16x32xbf16>, vector<32x32xbf16>, vector<16x32xf32> -> vector<16x32xf32>
    %47 = vector.extract_strided_slice %30 {offsets = [2, 0], sizes = [1, 32], strides = [1, 1]} : vector<5x384xf32> to vector<1x32xf32>
    %48 = vector.broadcast %47 : vector<1x32xf32> to vector<16x32xf32>
    %49 = arith.addf %46, %48 : vector<16x32xf32>
    %cst_10 = arith.constant 0.000000e+00 : f32
    %50 = vector.broadcast %cst_10 : f32 to vector<16x32xf32>
    %51 = arith.maximumf %49, %50 : vector<16x32xf32>
    %52 = arith.truncf %43 : vector<8x32xf32> to vector<8x32xbf16>
    %53 = vector.extract_strided_slice %27 {offsets = [32, 0], sizes = [32, 32], strides = [1, 1]} : vector<64x32xbf16> to vector<32x32xbf16>
    %cst_11 = arith.constant dense<0.000000e+00> : vector<8x32xf32>
    %54 = tpu.matmul %52, %53, %cst_11 {dimension_numbers = #tpu.dot_dimension_numbers<[1], [0], [0], [1], [0, 0, 1, 1], [], []>} : vector<8x32xbf16>, vector<32x32xbf16>, vector<8x32xf32> -> vector<8x32xf32>
    %55 = vector.extract_strided_slice %30 {offsets = [3, 0], sizes = [1, 32], strides = [1, 1]} : vector<5x384xf32> to vector<1x32xf32>
    %56 = vector.broadcast %55 : vector<1x32xf32> to vector<8x32xf32>
    %57 = arith.addf %54, %56 : vector<8x32xf32>
    %cst_12 = arith.constant 0.000000e+00 : f32
    %58 = vector.broadcast %cst_12 : f32 to vector<8x32xf32>
    %59 = arith.maximumf %57, %58 : vector<8x32xf32>
    %60 = tpu.concatenate %51, %59 in 0 : vector<16x32xf32>, vector<8x32xf32> -> vector<24x32xf32>
    %61 = arith.truncf %60 : vector<24x32xf32> to vector<24x32xbf16>
    %62 = arith.index_cast %arg0 : i32 to index
    %c0_13 = arith.constant 0 : index
    %c0_14 = arith.constant 0 : index
    %c0_15 = arith.constant 0 : index
    %63 = vector.load %arg3[%62, %c0_13, %c0_14, %c0_15] : memref<4x3x2x24xbf16, #tpu.memory_space<vmem>>, vector<1x3x2x24xbf16>
    %64 = vector.shape_cast %63 : vector<1x3x2x24xbf16> to vector<3x2x24xbf16>
    %65 = vector.extract_strided_slice %64 {offsets = [0, 0, 0], sizes = [1, 2, 24], strides = [1, 1, 1]} : vector<3x2x24xbf16> to vector<1x2x24xbf16>
    %66 = vector.shape_cast %65 : vector<1x2x24xbf16> to vector<2x24xbf16>
    %cst_16 = arith.constant dense<0.000000e+00> : vector<2x32xf32>
    %67 = tpu.matmul %66, %61, %cst_16 {dimension_numbers = #tpu.dot_dimension_numbers<[1], [0], [0], [1], [0, 0, 1, 1], [], []>} : vector<2x24xbf16>, vector<24x32xbf16>, vector<2x32xf32> -> vector<2x32xf32>
    %68 = vector.extract_strided_slice %64 {offsets = [1, 0, 0], sizes = [1, 2, 24], strides = [1, 1, 1]} : vector<3x2x24xbf16> to vector<1x2x24xbf16>
    %69 = vector.shape_cast %68 : vector<1x2x24xbf16> to vector<2x24xbf16>
    %cst_17 = arith.constant dense<0.000000e+00> : vector<2x32xf32>
    %70 = tpu.matmul %69, %61, %cst_17 {dimension_numbers = #tpu.dot_dimension_numbers<[1], [0], [0], [1], [0, 0, 1, 1], [], []>} : vector<2x24xbf16>, vector<24x32xbf16>, vector<2x32xf32> -> vector<2x32xf32>
    %71 = vector.extract_strided_slice %64 {offsets = [2, 0, 0], sizes = [1, 2, 24], strides = [1, 1, 1]} : vector<3x2x24xbf16> to vector<1x2x24xbf16>
    %72 = vector.shape_cast %71 : vector<1x2x24xbf16> to vector<2x24xbf16>
    %cst_18 = arith.constant dense<0.000000e+00> : vector<2x32xf32>
    %73 = tpu.matmul %72, %61, %cst_18 {dimension_numbers = #tpu.dot_dimension_numbers<[1], [0], [0], [1], [0, 0, 1, 1], [], []>} : vector<2x24xbf16>, vector<24x32xbf16>, vector<2x32xf32> -> vector<2x32xf32>
    %74 = tpu.concatenate %67, %70, %73 in 1 : vector<2x32xf32>, vector<2x32xf32>, vector<2x32xf32> -> vector<2x96xf32>
    %75 = arith.truncf %74 : vector<2x96xf32> to vector<2x96xbf16>
    %76 = arith.index_cast %arg0 : i32 to index
    %c0_19 = arith.constant 0 : index
    %c0_20 = arith.constant 0 : index
    %77 = vector.load %arg6[%76, %c0_19, %c0_20] : memref<4x96x384xbf16, #tpu.memory_space<vmem>>, vector<1x96x384xbf16>
    %78 = vector.shape_cast %77 : vector<1x96x384xbf16> to vector<96x384xbf16>
    %cst_21 = arith.constant dense<0.000000e+00> : vector<2x384xf32>
    %79 = tpu.matmul %75, %78, %cst_21 {dimension_numbers = #tpu.dot_dimension_numbers<[1], [0], [0], [1], [0, 0, 1, 1], [], []>} : vector<2x96xbf16>, vector<96x384xbf16>, vector<2x384xf32> -> vector<2x384xf32>
    %80 = vector.extract_strided_slice %30 {offsets = [4, 0], sizes = [1, 384], strides = [1, 1]} : vector<5x384xf32> to vector<1x384xf32>
    %81 = vector.broadcast %80 : vector<1x384xf32> to vector<2x384xf32>
    %82 = arith.addf %79, %81 : vector<2x384xf32>
    %cst_22 = arith.constant 0.000000e+00 : f32
    %83 = vector.broadcast %cst_22 : f32 to vector<2x384xf32>
    %84 = arith.maximumf %82, %83 : vector<2x384xf32>
    %c0_i32 = arith.constant 0 : i32
    %85 = arith.cmpi eq, %arg0, %c0_i32 : i32
    %86 = arith.extui %85 : i1 to i32
    %c0_i32_23 = arith.constant 0 : i32
    %87 = arith.cmpi ne, %86, %c0_i32_23 : i32
    scf.if %87 {
      %c0_32 = arith.constant 0 : index
      %c0_33 = arith.constant 0 : index
      %99 = vector.load %arg1[%c0_32, %c0_33] : memref<2x1xi32, #tpu.memory_space<vmem>>, vector<2x1xi32>
      %100 = tpu.iota {dimensions = array<i32: 1>} : vector<2x16xi32>
      %101 = vector.broadcast %99 : vector<2x1xi32> to vector<2x16xi32>
      %102 = arith.cmpi eq, %101, %100 : vector<2x16xi32>
      %103 = arith.extui %102 : vector<2x16xi1> to vector<2x16xi32>
      %104 = arith.sitofp %103 : vector<2x16xi32> to vector<2x16xf32>
      %105 = arith.truncf %104 : vector<2x16xf32> to vector<2x16xbf16>
      %c0_34 = arith.constant 0 : index
      %c0_35 = arith.constant 0 : index
      %106 = vector.load %arg8[%c0_34, %c0_35] : memref<16x32xbf16, #tpu.memory_space<vmem>>, vector<16x32xbf16>
      %cst_36 = arith.constant dense<0.000000e+00> : vector<2x32xf32>
      %107 = tpu.matmul %105, %106, %cst_36 {dimension_numbers = #tpu.dot_dimension_numbers<[1], [0], [0], [1], [0, 0, 1, 1], [], []>} : vector<2x16xbf16>, vector<16x32xbf16>, vector<2x32xf32> -> vector<2x32xf32>
      %c0_37 = arith.constant 0 : index
      %c0_38 = arith.constant 0 : index
      %108 = vector.load %arg13[%c0_37, %c0_38] : memref<2x32xf32, #tpu.memory_space<vmem>>, vector<2x32xf32>
      tpu.vector_store %arg13[%c0_37, %c0_38], %107 {strides = array<i32>} : memref<2x32xf32, #tpu.memory_space<vmem>>, vector<2x32xf32>,
    } else {
    }
    %c0_24 = arith.constant 0 : index
    %c0_25 = arith.constant 0 : index
    %88 = vector.load %arg13[%c0_24, %c0_25] : memref<2x32xf32, #tpu.memory_space<vmem>>, vector<2x32xf32>
    %89 = arith.truncf %84 : vector<2x384xf32> to vector<2x384xbf16>
    %90 = arith.index_cast %arg0 : i32 to index
    %c0_26 = arith.constant 0 : index
    %c0_27 = arith.constant 0 : index
    %91 = vector.load %arg9[%90, %c0_26, %c0_27] : memref<4x384x32xbf16, #tpu.memory_space<vmem>>, vector<1x384x32xbf16>
    %92 = vector.shape_cast %91 : vector<1x384x32xbf16> to vector<384x32xbf16>
    %cst_28 = arith.constant dense<0.000000e+00> : vector<2x32xf32>
    %93 = tpu.matmul %89, %92, %cst_28 {dimension_numbers = #tpu.dot_dimension_numbers<[1], [0], [0], [1], [0, 0, 1, 1], [], []>} : vector<2x384xbf16>, vector<384x32xbf16>, vector<2x32xf32> -> vector<2x32xf32>
    %94 = arith.addf %88, %93 : vector<2x32xf32>
    %c0_29 = arith.constant 0 : index
    %c0_30 = arith.constant 0 : index
    %95 = vector.load %arg13[%c0_29, %c0_30] : memref<2x32xf32, #tpu.memory_space<vmem>>, vector<2x32xf32>
    tpu.vector_store %arg13[%c0_29, %c0_30], %94 {strides = array<i32>} : memref<2x32xf32, #tpu.memory_space<vmem>>, vector<2x32xf32>,
    %c3_i32 = arith.constant 3 : i32
    %96 = arith.cmpi eq, %arg0, %c3_i32 : i32
    %97 = arith.extui %96 : i1 to i32
    %c0_i32_31 = arith.constant 0 : i32
    %98 = arith.cmpi ne, %97, %c0_i32_31 : i32
    scf.if %98 {
      %c0_32 = arith.constant 0 : index
      %c0_33 = arith.constant 0 : index
      %99 = vector.load %arg10[%c0_32, %c0_33] : memref<2x32xf32, #tpu.memory_space<vmem>>, vector<2x32xf32>
      %c0_34 = arith.constant 0 : index
      %c0_35 = arith.constant 0 : index
      %100 = vector.load %arg13[%c0_34, %c0_35] : memref<2x32xf32, #tpu.memory_space<vmem>>, vector<2x32xf32>
      %101 = vector.extract_strided_slice %99 {offsets = [0, 0], sizes = [1, 32], strides = [1, 1]} : vector<2x32xf32> to vector<1x32xf32>
      %102 = vector.broadcast %101 : vector<1x32xf32> to vector<2x32xf32>
      %103 = arith.addf %100, %102 : vector<2x32xf32>
      %cst_36 = arith.constant 0.000000e+00 : f32
      %104 = vector.broadcast %cst_36 : f32 to vector<2x32xf32>
      %105 = arith.maximumf %103, %104 : vector<2x32xf32>
      %106 = arith.truncf %105 : vector<2x32xf32> to vector<2x32xbf16>
      %c0_37 = arith.constant 0 : index
      %c0_38 = arith.constant 0 : index
      %107 = vector.load %arg11[%c0_37, %c0_38] : memref<32x1xbf16, #tpu.memory_space<vmem>>, vector<32x1xbf16>
      %cst_39 = arith.constant dense<0.000000e+00> : vector<2x1xf32>
      %108 = tpu.matmul %106, %107, %cst_39 {dimension_numbers = #tpu.dot_dimension_numbers<[1], [0], [0], [1], [0, 0, 1, 1], [], []>} : vector<2x32xbf16>, vector<32x1xbf16>, vector<2x1xf32> -> vector<2x1xf32>
      %109 = vector.extract_strided_slice %99 {offsets = [1, 0], sizes = [1, 1], strides = [1, 1]} : vector<2x32xf32> to vector<1x1xf32>
      %110 = vector.broadcast %109 : vector<1x1xf32> to vector<2x1xf32>
      %111 = arith.addf %108, %110 : vector<2x1xf32>
      %c0_40 = arith.constant 0 : index
      %c0_41 = arith.constant 0 : index
      %112 = vector.load %arg12[%c0_40, %c0_41] : memref<2x1xf32, #tpu.memory_space<vmem>>, vector<2x1xf32>
      tpu.vector_store %arg12[%c0_40, %c0_41], %111 {strides = array<i32>} : memref<2x1xf32, #tpu.memory_space<vmem>>, vector<2x1xf32>,
    } else {
    }
    return
  }
  func.func @transform_0(%arg0: i32) -> (i32, i32) {
    %c0_i32 = arith.constant 0 : i32
    %c0_i32_0 = arith.constant 0 : i32
    %c0_i32_1 = arith.constant 0 : i32
    return %c0_i32, %c0_i32_0 : i32, i32
  }
  func.func @transform_1(%arg0: i32) -> (i32, i32, i32) {
    %c0_i32 = arith.constant 0 : i32
    %c0_i32_0 = arith.constant 0 : i32
    %c0_i32_1 = arith.constant 0 : i32
    %c0_i32_2 = arith.constant 0 : i32
    return %c0_i32, %c0_i32_0, %c0_i32_1 : i32, i32, i32
  }
  func.func @transform_2(%arg0: i32) -> (i32, i32, i32, i32) {
    %c0_i32 = arith.constant 0 : i32
    %c0_i32_0 = arith.constant 0 : i32
    %c0_i32_1 = arith.constant 0 : i32
    %c0_i32_2 = arith.constant 0 : i32
    %c0_i32_3 = arith.constant 0 : i32
    return %c0_i32, %c0_i32_0, %c0_i32_1, %c0_i32_2 : i32, i32, i32, i32
  }
  func.func @transform_3(%arg0: i32) -> (i32, i32, i32) {
    %c0_i32 = arith.constant 0 : i32
    %c0_i32_0 = arith.constant 0 : i32
    %c0_i32_1 = arith.constant 0 : i32
    %c0_i32_2 = arith.constant 0 : i32
    return %c0_i32, %c0_i32_0, %c0_i32_1 : i32, i32, i32
  }
  func.func @transform_4(%arg0: i32) -> (i32, i32, i32) {
    %c0_i32 = arith.constant 0 : i32
    %c0_i32_0 = arith.constant 0 : i32
    %c0_i32_1 = arith.constant 0 : i32
    %c0_i32_2 = arith.constant 0 : i32
    return %c0_i32, %c0_i32_0, %c0_i32_1 : i32, i32, i32
  }
  func.func @transform_5(%arg0: i32) -> (i32, i32, i32) {
    %c0_i32 = arith.constant 0 : i32
    %c0_i32_0 = arith.constant 0 : i32
    %c0_i32_1 = arith.constant 0 : i32
    %c0_i32_2 = arith.constant 0 : i32
    return %c0_i32, %c0_i32_0, %c0_i32_1 : i32, i32, i32
  }
  func.func @transform_6(%arg0: i32) -> (i32, i32, i32) {
    %c0_i32 = arith.constant 0 : i32
    %c0_i32_0 = arith.constant 0 : i32
    %c0_i32_1 = arith.constant 0 : i32
    %c0_i32_2 = arith.constant 0 : i32
    return %c0_i32, %c0_i32_0, %c0_i32_1 : i32, i32, i32
  }
  func.func @transform_7(%arg0: i32) -> (i32, i32) {
    %c0_i32 = arith.constant 0 : i32
    %c0_i32_0 = arith.constant 0 : i32
    %c0_i32_1 = arith.constant 0 : i32
    return %c0_i32, %c0_i32_0 : i32, i32
  }
  func.func @transform_8(%arg0: i32) -> (i32, i32, i32) {
    %c0_i32 = arith.constant 0 : i32
    %c0_i32_0 = arith.constant 0 : i32
    %c0_i32_1 = arith.constant 0 : i32
    %c0_i32_2 = arith.constant 0 : i32
    return %c0_i32, %c0_i32_0, %c0_i32_1 : i32, i32, i32
  }
  func.func @transform_9(%arg0: i32) -> (i32, i32) {
    %c0_i32 = arith.constant 0 : i32
    %c0_i32_0 = arith.constant 0 : i32
    %c0_i32_1 = arith.constant 0 : i32
    return %c0_i32, %c0_i32_0 : i32, i32
  }
  func.func @transform_10(%arg0: i32) -> (i32, i32) {
    %c0_i32 = arith.constant 0 : i32
    %c0_i32_0 = arith.constant 0 : i32
    %c0_i32_1 = arith.constant 0 : i32
    return %c0_i32, %c0_i32_0 : i32, i32
  }
  func.func @transform_11(%arg0: i32) -> (i32, i32) {
    %c0_i32 = arith.constant 0 : i32
    %c0_i32_0 = arith.constant 0 : i32
    %c0_i32_1 = arith.constant 0 : i32
    return %c0_i32, %c0_i32_0 : i32, i32
  }
}

</mosaic_0001>

<bundles_post_ra>
// kernel: angel_forward.1
= control target key start
LH: loop header
LB: loop body
LE: loop exit
PB: predicated region body
PF: predicated region fallthrough
CT: control target
= control target key end

     0   :  { %16 = vsyncpa [#allocation4], 0  ;;  %s1990_s0 = inlined_call_operand.vmem [shape: s32[2,1], index: 0, kind: input, shape index: {}]   ;;  %s1991_s1 = inlined_call_operand.vmem [shape: s32[4,24,4], index: 1, kind: input, shape index: {}]   ;;  %s1992_s2 = inlined_call_operand.vmem [shape: bf16[4,3,2,24], index: 2, kind: input, shape index: {}]   ;;  %s1993_s3 = inlined_call_operand.vmem [shape: bf16[4,128,32], index: 3, kind: input, shape index: {}]   ;;  %s1994_s4 = inlined_call_operand.vmem [shape: bf16[4,64,32], index: 4, kind: input, shape index: {}]   ;;  %s1995_s5 = inlined_call_operand.hbm [shape: bf16[4,96,384], index: 5, kind: input, shape index: {}]   ;;  %s1996_s6 = inlined_call_operand.vmem [shape: f32[4,5,384], index: 6, kind: input, shape index: {}]   ;;  %s1997_s7 = inlined_call_operand.vmem [shape: bf16[16,32], index: 7, kind: input, shape index: {}]   ;;  %s1998_s8 = inlined_call_operand.hbm [shape: bf16[4,384,32], index: 8, kind: input, shape index: {}]   ;;  %s1999_s9 = inlined_call_operand.vmem [shape: f32[2,32], index: 9, kind: input, shape index: {}]   ;;  %s2000_s10 = inlined_call_operand.vmem [shape: bf16[32,1], index: 10, kind: input, shape index: {}]   ;;  %s2001_s11 = inlined_call_operand.vmem [shape: f32[2,1], index: 11, kind: output, shape index: {}]  }
   0x1   :  { %17 = vsyncpa [#allocation6], 0  ;;  %s1782_s17 = smov 0  }
   0x2 LB: > { %s306_s20 = sshll.u32 %s1995_s5, 4  ;;  %s1791_s21 = sadd.s32 4294967295, %s1705_s17   ;;  %s1705_s17 = sphi %s1782_s17, %s23_s17   ;;  %s307_s20 = int_to_ptr.hbm [resolvable:$true] %s306_s20 }
   0x3   : > { %p1255_p0 = scmp.ge.s32.totalorder %s1705_s17, 1  ;;  %p280_p1 = scmp.lt.s32.totalorder %s1705_s17, 5 }
   0x4   : > { %p1256_p2 = scmp.ne.s32.totalorder %s1791_s21, 0  ;;  %p1595_p3 = scmp.eq.s32.totalorder %s1791_s21, 0 }
   0x5   : > { %p1797_p4 = pnand %p1255_p0, %p280_p1  ;;  %s1707_s23 = smov [#allocation3]  }
   0x6   : > { %s308_s24 = sshll.u32 %s1707_s23, 4  ;;  %s326_s27 = sshll.u32 %s1998_s8, 4  ;;  %s309_s24 = int_to_ptr.vmem [resolvable:$true] %s308_s24  ;;  %s327_s27 = int_to_ptr.hbm [resolvable:$true] %s326_s27 }
   0x7   : > { %p1588_p5 = pneg %p1797_p4  ;;  %s1708_s28 = smov [#allocation5]  }
   0x8   : > { %s328_s29 = sshll.u32 %s1708_s28, 4  ;;  %s1709_s30 = smov 192   ;;  %s329_s29 = int_to_ptr.vmem [resolvable:$true] %s328_s29 }
   0x9   : > { %p1589_p6 = pnand %p1595_p3, %p1588_p5  ;;  %s1710_s12 = smov 12  }
   0xa   : > { %s1711_s13 = smov 64   ;;  %s1712_s14 = smov 4  }
   0xb   : > { %1591 = dma.hbm_to_vmem [thread:$0]  (!%p1589_p6), %s307_s20, 9216, %s309_s24, [#allocation4], %s1709_s30, %s1709_s30, %s1710_s12  }
   0xc   : > { %1594 = dma.hbm_to_vmem [thread:$0]  (!%p1589_p6), %s327_s27, 12288, %s329_s29, [#allocation6], %s1711_s13, %s1711_s13, %s1712_s14  }
   0xd   : > { %350 = sbr.rel (%p1797_p4) target bundleno = 1417 (0x589), region = 64 }
  0x12   : > { %1696 = dma.done.wait (%p1595_p3), [#allocation4], 9216  }
  0x13   : > { %1698 = vsyncadd (%p1595_p3), [#allocation4], 4294958080 }
  0x14   : > { %1700 = dma.done.wait (%p1595_p3), [#allocation6], 12288  }
  0x15   : > { %1702 = vsyncadd (%p1595_p3), [#allocation6], 4294955008  ;;  %s387_s15 = smul.u32 24, %s1791_s21  ;;  %v1713_v0 = vmov 1   ;;  %v1714_v1 = vmov 0   ;;  %v1715_v2 = vmov 2   ;;  %v392_v18 = vlaneseq }
  0x16   : > { %1623 = vset.pattern.permute.xlu1 %v1713_v0  ;;  %1622 = vset.pattern.permute.xlu0 %v1714_v1  ;;  %s1518_s16 = sshll.u32 %s1791_s21, 6  ;;  %v1716_v8 = vmov 3   ;;  %v1717_v26 = vmov 1.0|1.0   ;;  %s1527_s25 = sshll.u32 %s1791_s21, 5 }
  0x17   : > { %1624 = vset.pattern.permute.xlu2 %v1715_v2  ;;  %s388_s20 = scalar_lea.vmem %s1991_s1, %s387_s15  ;;  %s1828_s24 = scalar_lea.vmem %s1993_s3, %s1518_s16  ;;  %v1838_v19 = vand.u32 127, %v392_v18 }
  0x18   : > { %v389_v3 = vld [vmem:[%s388_s20] sm:$0xff]  ;;  %v1526_v4 = vld [vmem:[%s1828_s24 + $0x38] sm:$0xff]  ;;  %v1525_v5 = vld [vmem:[%s1828_s24 + $0x30] sm:$0xff]  ;;  %s480_s28 = scalar_lea.vmem %s1994_s4, %s1527_s25  ;;  %s1861_s12 = scalar_lea.vmem %s1996_s6, %s387_s15 }
  0x19   : > { %407 = vperm.xlu1 %1623, %v389_v3   ;;  %395 = vperm.xlu0 %1622, %v389_v3   ;;  %v390_v6 = vld [vmem:[%s388_s20 + $0x8] sm:$0xff]  ;;  %v391_v9 = vld [vmem:[%s388_s20 + $0x10] sm:$0xff]  ;;  %v1523_v10 = vld [vmem:[%s1828_s24 + $0x20] sm:$0xff]  ;;  %s489_s13 = smul.u32 3, %s1791_s21  ;;  %s1718_s20 = smov 32  }
  0x1a   : > { %422 = vperm.xlu2 %1624, %v389_v3   ;;  %543 = vmatpush.bf16.msra.mxu0 %v1526_v4  ;;  %v1524_v7 = vld [vmem:[%s1828_s24 + $0x28] sm:$0xff]  ;;  %v1522_v11 = vld [vmem:[%s1828_s24 + $0x18] sm:$0xff]  ;;  %v1521_v12 = vld [vmem:[%s1828_s24 + $0x10] sm:$0xff]  ;;  %s1533_s18 = smul.u32 144, %s1791_s21  ;;  %s1719_s22 = smov 64  }
  0x1b   : > { %v1520_v13 = vld [vmem:[%s1828_s24 + $0x8] sm:$0xff]  ;;  %v1519_v14 = vld [vmem:[%s1828_s24] sm:$0xff]  ;;  %v1531_v32 = vld [vmem:[%s480_s28 + $0x18] sm:$0xff]  ;;  %s636_s16 = scalar_lea.vmem %s1992_s2, %s489_s13 }
  0x1c   : > { %v1529_v30 = vld [vmem:[%s480_s28 + $0x8] sm:$0xff]  ;;  %v1528_v31 = vld [vmem:[%s480_s28] sm:$0xff]  ;;  %626 = vmatpush.bf16.msra.mxu2 %v1531_v32  ;;  %v1530_v33 = vld [vmem:[%s480_s28 + $0x10] sm:$0xff]  ;;  %s1877_s19 = scalar_lea.vmem [#allocation3], %s1533_s18 }
  0x1d   : > { %593 = vmatpush.bf16.msra.mxu1 %v1529_v30  ;;  %v1864_v34 = vld [vmem:[%s1861_s12] sm:$0x1f]  ;;  %v1548_v18 = vld [vmem:[%s1877_s19 + $0x70] sm:$0xf0]  ;;  %v1541_v32 = vld [vmem:[%s1877_s19 + $0x38] sm:$0xf0] }
  0x1e   : > { %544 = vmatpush.bf16.msra.mxu0 %v1525_v5  ;;  %v561_v36 = vperm.slane %v1864_v34, 0  ;;  %v566_v43 = vperm.slane %v1864_v34, 1  ;;  %v604_v50 = vperm.slane %v1864_v34, 3  ;;  %v570_v52 = vperm.slane %v1864_v34, 2  ;;  %v1550_v4 = vld [vmem:[%s1877_s19 + $0x80] sm:$0xf0] }
  0x1f   : > { %v1549_v5 = vld [vmem:[%s1877_s19 + $0x7c] sm:$0xf] }
  0x20   : > { %627 = vmatpush.bf16.msra.mxu2 %v1530_v33  ;;  %v1540_v33 = vld [vmem:[%s1877_s19 + $0x34] sm:$0xf] }
  0x21   : > { %410 = vperm.xlu1 %1623, %v390_v6   ;;  %398 = vperm.xlu0 %1622, %v390_v6  }
  0x22   : > { %425 = vperm.xlu2 %1624, %v390_v6   ;;  %545 = vmatpush.bf16.msra.mxu0 %v1524_v7  ;;  %v1391_v7 = vld [vmem:[%s1877_s19 + $0x84] sm:$0xf0] }
  0x23   : > { %594 = vmatpush.bf16.msra.mxu1 %v1528_v31  ;;  %v1353_v31 = vld [vmem:[%s1877_s19 + $0x30] sm:$0xf] }
  0x26   : > { %546 = vmatpush.bf16.msra.mxu0 %v1523_v10  ;;  %v1394_v10 = vor.u32 %v1549_v5, %v1391_v7 }
  0x29   : > { %1626 = vset.pattern.permute.xlu1 %v1716_v8  ;;  %1625 = vset.pattern.permute.xlu0 %v1716_v8  ;;  %v1397_v8 = vld [vmem:[%s1877_s19 + $0x80] sm:$0xf] }
  0x2a   : > { %440 = vperm.xlu1 %1626, %v390_v6   ;;  %437 = vperm.xlu0 %1625, %v389_v3   ;;  %v1389_v3 = vld [vmem:[%s1877_s19 + $0x78] sm:$0xf] }
  0x2b   : > { %1627 = vset.pattern.permute.xlu2 %v1714_v1  ;;  %547 = vmatpush.bf16.msra.mxu0 %v1522_v11  ;;  %v637_v1 = vld [vmem:[%s636_s16] sm:$0x1]  ;;  %v1390_v6 = vor.u32 %v1550_v4, %v1389_v3 }
  0x2c   : > { %401 = vperm.xlu2 %1627, %v391_v9  }
  0x2f   : > { %548 = vmatpush.bf16.msra.mxu0 %v1521_v12  ;;  %v1377_v12 = vld [vmem:[%s1877_s19 + $0x60] sm:$0xf] }
  0x32   : > { %1628 = vset.pattern.permute.xlu1 %v1713_v0  ;;  %443 = vperm.xlu0 %1625, %v391_v9   ;;  %v638_v0 = vld [vmem:[%s636_s16 + $0x1] sm:$0x1] }
  0x33   : > { %413 = vperm.xlu1 %1628, %v391_v9   ;;  %549 = vmatpush.bf16.msra.mxu0 %v1520_v13  ;;  %v1547_v13 = vld [vmem:[%s1877_s19 + $0x68] sm:$0xf0] }
  0x34   : > { %1629 = vset.pattern.permute.xlu2 %v1715_v2  ;;  %v639_v2 = vld [vmem:[%s636_s16 + $0x2] sm:$0x1] }
  0x35   : > { %428 = vperm.xlu2 %1629, %v391_v9   ;;  %v1551_v9 = vld [vmem:[%s1877_s19 + $0x88] sm:$0xf0] }
  0x36   : > { %v1398_v11 = vor.u32 %v1551_v9, %v1397_v8 }
  0x37   : > { %550 = vmatpush.bf16.msra.mxu0 %v1519_v14  ;;  %v1546_v14 = vld [vmem:[%s1877_s19 + $0x64] sm:$0xf] }
  0x74   : > { %v423_v15 = vpop.permute.xlu2 %422 }
  0x75   : > { %vm430_vm4 = vcmp.eq.s32.totalorder %v423_v15, %v1838_v19  ;;  %v1378_v15 = vor.u32 %v1547_v13, %v1377_v12  ;;  %v732_v12 = vperm.slane %v1864_v34, 4 }
  0x7c   : > { %v426_v20 = vpop.permute.xlu2 %425 }
  0x7d   : > { %vm431_vm7 = vcmp.eq.s32.totalorder %v426_v20, %v1838_v19 }
  0x86   : > { %v402_v23 = vpop.permute.xlu2 %401 }
  0x87   : > { %vm405_vm15 = vcmp.eq.s32.totalorder %v402_v23, %v1838_v19  ;;  %v1544_v23 = vld [vmem:[%s1877_s19 + $0x50] sm:$0xf0] }
  0x8b   : > { %v408_v16 = vpop.permute.xlu1 %407  ;;  %v396_v17 = vpop.permute.xlu0 %395 }
  0x8c   : > { %vm415_vm0 = vcmp.eq.s32.totalorder %v408_v16, %v1838_v19  ;;  %vm403_vm1 = vcmp.eq.s32.totalorder %v396_v17, %v1838_v19  ;;  %v1379_v16 = vld [vmem:[%s1877_s19 + $0x6c] sm:$0xf0]  ;;  %v1385_v17 = vld [vmem:[%s1877_s19 + $0x68] sm:$0xf] }
  0x8d   : > { %vm418_vm5 = vmor %vm403_vm1, %vm415_vm0  ;;  %v1382_v20 = vor.u32 %v1546_v14, %v1379_v16 }
  0x8e   : > { %vm433_vm8 = vmor %vm418_vm5, %vm430_vm4 }
  0x8f   : > { %v429_v27 = vpop.permute.xlu2 %428 }
  0x93   : > { %v411_v21 = vpop.permute.xlu1 %410  ;;  %v399_v22 = vpop.permute.xlu0 %398 }
  0x94   : > { %vm416_vm2 = vcmp.eq.s32.totalorder %v411_v21, %v1838_v19  ;;  %vm404_vm3 = vcmp.eq.s32.totalorder %v399_v22, %v1838_v19  ;;  %v1386_v21 = vor.u32 %v1548_v18, %v1385_v17  ;;  %v1365_v22 = vld [vmem:[%s1877_s19 + $0x48] sm:$0xf] }
  0x95   : > { %vm419_vm6 = vmor %vm404_vm3, %vm416_vm2  ;;  %vm432_vm2 = vcmp.eq.s32.totalorder %v429_v27, %v1838_v19  ;;  %v1545_v27 = vld [vmem:[%s1877_s19 + $0x58] sm:$0xf0] }
  0x96   : > { %vm434_vm9 = vmor %vm419_vm6, %vm431_vm7  ;;  %vm583_vm7 = vcmask 261120  }
  0x9c   : > { %v441_v24 = vpop.permute.xlu1 %440  ;;  %v438_v25 = vpop.permute.xlu0 %437 }
  0x9d   : > { %vm446_vm10 = vcmp.eq.s32.totalorder %v441_v24, %v1838_v19  ;;  %vm445_vm11 = vcmp.eq.s32.totalorder %v438_v25, %v1838_v19  ;;  %v1543_v24 = vld [vmem:[%s1877_s19 + $0x4c] sm:$0xf]  ;;  %v1367_v25 = vld [vmem:[%s1877_s19 + $0x54] sm:$0xf0] }
  0x9e   : > { %vm449_vm12 = vmor %vm434_vm9, %vm446_vm10  ;;  %vm640_vm9 = vcmask 195584   ;;  %vm702_vm10 = vcmask 523264  }
  0x9f   : > { %vm448_vm13 = vmor %vm433_vm8, %vm445_vm11  ;;  %vm644_vm8 = vcmask 1043456   ;;  %vm831_vm11 = vcmask 785408  }
  0xa0   : > { %vm1301_vm14 = vmpackc.low %vm449_vm12, %vm448_vm13 }
  0xa1   : > { %1302 = vmatmul.msk.bf16.vlgmr.msra.gmra.mxu0 %vm1301_vm14, %v1717_v26 }
  0xa4   : > { %v444_v29 = vpop.permute.xlu0 %443 }
  0xa5   : > { %v414_v28 = vpop.permute.xlu1 %413  ;;  %vm447_vm4 = vcmp.eq.s32.totalorder %v444_v29, %v1838_v19  ;;  %v1370_v29 = vor.u32 %v1543_v24, %v1367_v25 }
  0xa6   : > { %vm417_vm0 = vcmp.eq.s32.totalorder %v414_v28, %v1838_v19  ;;  %v1366_v28 = vor.u32 %v1544_v23, %v1365_v22 }
  0xa7   : > { %vm420_vm1 = vmor %vm405_vm15, %vm417_vm0 }
  0xa8   : > { %vm435_vm3 = vmor %vm420_vm1, %vm432_vm2 }
  0xa9   : > { %vm450_vm5 = vmor %vm435_vm3, %vm447_vm4 }
  0xaa   : > { %vm1303_vm6 = vmpackc.low %vm450_vm5, %vm450_vm5 }
  0xb1   : > { %1304 = vmatmul.msk.bf16.gmra.mxu0 %vm1303_vm6, %v1717_v26  ;;  %v1373_v26 = vld [vmem:[%s1877_s19 + $0x50] sm:$0xf] }
  0xb2   : > { %v1374_v30 = vor.u32 %v1545_v27, %v1373_v26 }
 0x11e   : > { %v552_v35 = vpop.f32.mrf.mxu0 }
 0x11f   : > { %v562_v37 = vadd.f32 %v561_v36, %v552_v35  ;;  %v1355_v35 = vld [vmem:[%s1877_s19 + $0x3c] sm:$0xf0] }
 0x121   : > { %v564_v40 = vmax.f32 %v562_v37, 0.0  ;;  %v1542_v37 = vld [vmem:[%s1877_s19 + $0x40] sm:$0xf0] }
 0x126   : > { %v554_v38 = vpop.f32.mrf.mxu0 }
 0x127   : > { %v563_v39 = vadd.f32 %v561_v36, %v554_v38  ;;  %v1361_v36 = vld [vmem:[%s1877_s19 + $0x38] sm:$0xf]  ;;  %v1354_v38 = vor.u32 %v1541_v32, %v1353_v31 }
 0x129   : > { %v565_v41 = vmax.f32 %v563_v39, 0.0  ;;  %v1358_v39 = vor.u32 %v1540_v33, %v1355_v35 }
 0x12b   : > { %v569_v42 = vpack.c.bf16 %v565_v41, %v564_v40  ;;  %v1362_v40 = vor.u32 %v1542_v37, %v1361_v36  ;;  %v1341_v41 = vld [vmem:[%s1877_s19 + $0x18] sm:$0xf] }
 0x12d   : > { %1313 = vmatmul.msk.bf16.vlgmr.msra.gmra.mxu1 %vm583_vm7, %v569_v42  ;;  %v1538_v42 = vld [vmem:[%s1877_s19 + $0x20] sm:$0xf0] }
 0x12e   : > { %v557_v44 = vpop.f32.mrf.mxu0 }
 0x12f   : > { %v567_v45 = vadd.f32 %v566_v43, %v557_v44  ;;  %v1537_v43 = vld [vmem:[%s1877_s19 + $0x1c] sm:$0xf]  ;;  %v1343_v44 = vld [vmem:[%s1877_s19 + $0x24] sm:$0xf0] }
 0x131   : > { %v568_v46 = vmax.f32 %v567_v45, 0.0  ;;  %v1349_v45 = vld [vmem:[%s1877_s19 + $0x20] sm:$0xf] }
 0x133   : > { %v603_v47 = vpack.c.bf16 %v568_v46, %v568_v46  ;;  %v1539_v46 = vld [vmem:[%s1877_s19 + $0x28] sm:$0xf0] }
 0x135   : > { %1322 = vmatmul.msk.bf16.vlgmr.msra.gmra.mxu2 %vm583_vm7, %v603_v47  ;;  %v1342_v47 = vor.u32 %v1538_v42, %v1341_v41 }
 0x136   : > { %v559_v48 = vpop.f32.mrf.mxu0 }
 0x137   : > { %v1346_v48 = vor.u32 %v1537_v43, %v1343_v44 }
 0x1aa   : > { %v596_v49 = vpop.f32.mrf.mxu1 }
 0x1ab   : > { %v597_v57 = vadd.f32 %v596_v49, %v570_v52  ;;  %v1350_v49 = vor.u32 %v1539_v46, %v1349_v45 }
 0x1ad   : > { %v601_v61 = vmax.f32 %v597_v57, 0.0  ;;  %v1534_v57 = vld [vmem:[%s1877_s19 + $0x4] sm:$0xf] }
 0x1b2   : > { %v598_v51 = vpop.f32.mrf.mxu1 }
 0x1b3   : > { %v599_v55 = vadd.f32 %v598_v51, %v570_v52 }
 0x1b5   : > { %v602_v59 = vmax.f32 %v599_v55, 0.0  ;;  %v1329_v55 = vld [vmem:[%s1877_s19] sm:$0xf] }
 0x1b7   : > { %v634_v63 = vpack.c.bf16 %v602_v59, %v601_v61  ;;  %v1331_v59 = vld [vmem:[%s1877_s19 + $0xc] sm:$0xf0] }
 0x1b8   : > { %v629_v53 = vpop.f32.mrf.mxu2 }
 0x1b9   : > { %v630_v54 = vadd.f32 %v629_v53, %v604_v50 }
 0x1bb   : > { %v633_v56 = vmax.f32 %v630_v54, 0.0 }
 0x1bd   : > { %v635_v58 = vpack.c.bf16 %v633_v56, %v633_v56  ;;  %v1535_v56 = vld [vmem:[%s1877_s19 + $0x8] sm:$0xf0] }
 0x1bf   : > { %v646_v60 = vsel %vm644_vm8, %v635_v58, 0  ;;  %v1330_v58 = vor.u32 %v1535_v56, %v1329_v55 }
 0x1c0   : > { %v631_v62 = vpop.f32.mrf.mxu2  ;;  %654 = vmatpush.bf16.msra.mxu3 %v646_v60  ;;  %670 = vmatpush.bf16.msrb.mxu1 %v646_v60 }
 0x1c1   : > { %686 = vmatpush.bf16.msrb.mxu2 %v646_v60  ;;  %v1337_v60 = vld [vmem:[%s1877_s19 + $0x8] sm:$0xf]  ;;  %v1334_v62 = vor.u32 %v1534_v57, %v1331_v59 }
 0x1c4   : > { %655 = vmatpush.bf16.msra.mxu3 %v634_v63  ;;  %671 = vmatpush.bf16.msrb.mxu1 %v634_v63 }
 0x1c5   : > { %687 = vmatpush.bf16.msrb.mxu2 %v634_v63  ;;  %v1536_v63 = vld [vmem:[%s1877_s19 + $0x10] sm:$0xf0] }
 0x1c7   : > { %1324 = vmatmul.msk.bf16.vlgmr.msrb.gmra.mxu1 %vm640_vm9, %v638_v0  ;;  %1323 = vmatmul.msk.bf16.vlgmr.msra.gmra.mxu3 %vm640_vm9, %v637_v1  ;;  %v1338_v0 = vor.u32 %v1536_v63, %v1337_v60 }
 0x1c8   : > { %1325 = vmatmul.msk.bf16.vlgmr.msrb.gmra.mxu2 %vm640_vm9, %v639_v2  ;;  %837 = vmatpush.bf16.msrb.mxu3 %v1390_v6  ;;  %v493_v6 = vld [vmem:[%s1861_s12 + $0x8] sm:$0x1f] }
 0x1c9   : > { %850 = vmatpush.bf16.msra.mxu1 %v1394_v10  ;;  %863 = vmatpush.bf16.msra.mxu2 %v1398_v11  ;;  %v733_v7 = vperm.slane %v493_v6, 4  ;;  %v494_v10 = vld [vmem:[%s1861_s12 + $0x10] sm:$0x1f] }
 0x1ca   : > { %v734_v13 = vperm.slane %v494_v10, 4 }
 0x1cc   : > { %838 = vmatpush.bf16.msrb.mxu3 %v1378_v15 }
 0x1cd   : > { %851 = vmatpush.bf16.msra.mxu1 %v1382_v20  ;;  %864 = vmatpush.bf16.msra.mxu2 %v1386_v21 }
 0x1d0   : > { %839 = vmatpush.bf16.msrb.mxu3 %v1366_v28 }
 0x1d1   : > { %852 = vmatpush.bf16.msra.mxu1 %v1370_v29  ;;  %865 = vmatpush.bf16.msra.mxu2 %v1374_v30 }
 0x1d4   : > { %840 = vmatpush.bf16.msrb.mxu3 %v1354_v38 }
 0x1d5   : > { %853 = vmatpush.bf16.msra.mxu1 %v1358_v39  ;;  %866 = vmatpush.bf16.msra.mxu2 %v1362_v40 }
 0x1d8   : > { %841 = vmatpush.bf16.msrb.mxu3 %v1342_v47 }
 0x1d9   : > { %854 = vmatpush.bf16.msra.mxu1 %v1346_v48  ;;  %867 = vmatpush.bf16.msra.mxu2 %v1350_v49 }
 0x1dc   : > { %842 = vmatpush.bf16.msrb.mxu3 %v1330_v58 }
 0x1dd   : > { %855 = vmatpush.bf16.msra.mxu1 %v1334_v62  ;;  %868 = vmatpush.bf16.msra.mxu2 %v1338_v0 }
 0x244   : > { %v673_v50 = vpop.f32.mrf.mxu1 }
 0x245   : > { %694 = vrot.lane.b32.xlu1 %v673_v50, %s1718_s20 }
 0x24a   : > { %v657_v54 = vpop.f32.mrf.mxu3 }
 0x24b   : > { %v689_v51 = vpop.f32.mrf.mxu2 }
 0x24c   : > { %v675_v52 = vpop.f32.mrf.mxu1  ;;  %698 = vrot.lane.b32.xlu2 %v689_v51, %s1719_s22 }
 0x252   : > { %v659_v61 = vpop.f32.mrf.mxu3 }
 0x253   : > { %v691_v53 = vpop.f32.mrf.mxu2 }
 0x2a6   : > { %v699_v1 = vpop.permute.xlu2 %698 }
 0x2b7   : > { %v695_v2 = vpop.permute.xlu1 %694 }
 0x2b8   : > { %v701_v3 = vsel %vm583_vm7, %v657_v54, %v695_v2 }
 0x2b9   : > { %v703_v4 = vsel %vm702_vm10, %v701_v3, %v699_v1 }
 0x2ba   : > { %v704_v5 = vpack.c.bf16 %v703_v4, %v703_v4 }
 0x2bc   : > { %1399 = vmatmul.msk.bf16.vlgmr.msrb.gmra.mxu3 %vm831_vm11, %v704_v5  ;;  %1400 = vmatmul.msk.bf16.vlgmr.msra.gmra.mxu1 %vm831_vm11, %v704_v5 }
 0x2bd   : > { %1401 = vmatmul.msk.bf16.vlgmr.msra.gmra.mxu2 %vm831_vm11, %v704_v5 }
 0x339   : > { %v857_v8 = vpop.f32.mrf.mxu1 }
 0x33a   : > { %v1917_v9 = vadd.f32 %v857_v8, %v733_v7 }
 0x33c   : > { %v875_v11 = vmax.f32 %v1917_v9, 0.0 }
 0x33f   : > { %v844_v14 = vpop.f32.mrf.mxu3 }
 0x340   : > { %v1922_v15 = vadd.f32 %v844_v14, %v732_v12  ;;  %v870_v16 = vpop.f32.mrf.mxu2 }
 0x341   : > { %v1924_v17 = vadd.f32 %v870_v16, %v734_v13  ;;  %v859_v18 = vpop.f32.mrf.mxu1 }
 0x342   : > { %v874_v20 = vmax.f32 %v1922_v15, 0.0 }
 0x343   : > { %v876_v21 = vmax.f32 %v1924_v17, 0.0 }
 0x344   : > { %880 = sbr.rel (%p1256_p2) target bundleno = 1096 (0x448), region = 76 }
 0x347   : > { %v846_v22 = vpop.f32.mrf.mxu3 }
 0x348   : > { %v872_v23 = vpop.f32.mrf.mxu2 }
 0x349   : > { %v881_v34 = vld [vmem:[%s1990_s0] sm:$0x3]  ;;  %v1720_v24 = vmov 0   ;;  %v1721_v27 = vmov 0.0   ;;  %vm897_vm13 = vcmask 130048   ;;  %vm914_vm14 = vcmask 254976  }
 0x34a   : > { %1630 = vset.pattern.permute.xlu0 %v1720_v24  ;;  %v1552_v25 = vld [vmem:[%s1997_s7] sm:$0xff] }
 0x34b   : > { %883 = vperm.xlu0 %1630, %v881_v34   ;;  %908 = vmatpush.bf16.msra.mxu0 %v1552_v25 }
 0x3bd   : > { %v884_v26 = vpop.permute.xlu0 %883 }
 0x3be   : > { %vm885_vm12 = vcmp.eq.s32.totalorder %v884_v26, %v1838_v19 }
 0x3bf   : > { %v1403_v28 = vsel %vm885_vm12, 1.0, %v1721_v27 }
 0x3c0   : > { %v888_v29 = vpack.c.bf16 %v1403_v28, %v1403_v28 }
 0x3c2   : > { %1408 = vmatmul.msk.bf16.vlgmr.msra.gmra.mxu0 %vm897_vm13, %v888_v29 }
 0x43f   : > { %v910_v30 = vpop.f32.mrf.mxu0 }
 0x440   : > { %915 = vst.msk [vmem:[#allocation2] sm:$0x3] %vm914_vm14, %v910_v30 }
 0x447   : > { %v912_v31 = vpop.f32.mrf.mxu0 }
 0x448 PF: > { %s1553_s27 = smul.u32 192, %s1791_s21  ;;  %v917_v56 = vpack.c.bf16 %v874_v20, %v874_v20  ;;  %v918_v57 = vpack.c.bf16 %v875_v11, %v875_v11  ;;  %v919_v58 = vpack.c.bf16 %v876_v21, %v876_v21  ;;  %v916_v62 = vld [vmem:[#allocation2] sm:$0x3]  ;;  %vm1155_vm15 = vcmask 254976   ;;  %p1506_p7 = scmp.ne.s32.totalorder %s1791_s21, 3 }
 0x44a   : > { %s1938_s28 = scalar_lea.vmem [#allocation5], %s1553_s27 }
 0x44b   : > { %v1561_v19 = vld [vmem:[%s1938_s28 + $0x38] sm:$0xff]  ;;  %v1560_v35 = vld [vmem:[%s1938_s28 + $0x30] sm:$0xff]  ;;  %v1559_v38 = vld [vmem:[%s1938_s28 + $0x28] sm:$0xff] }
 0x44c   : > { %v1569_v32 = vld [vmem:[%s1938_s28 + $0x78] sm:$0xff]  ;;  %1115 = vmatpush.bf16.msra.mxu0 %v1561_v19  ;;  %v1568_v36 = vld [vmem:[%s1938_s28 + $0x70] sm:$0xff]  ;;  %v1567_v39 = vld [vmem:[%s1938_s28 + $0x68] sm:$0xff] }
 0x44d   : > { %v1577_v33 = vld [vmem:[%s1938_s28 + $0xb8] sm:$0xff]  ;;  %1128 = vmatpush.bf16.msra.mxu1 %v1569_v32  ;;  %v1576_v37 = vld [vmem:[%s1938_s28 + $0xb0] sm:$0xff]  ;;  %v1575_v40 = vld [vmem:[%s1938_s28 + $0xa8] sm:$0xff] }
 0x44e   : > { %1141 = vmatpush.bf16.msra.mxu2 %v1577_v33  ;;  %v1558_v41 = vld [vmem:[%s1938_s28 + $0x20] sm:$0xff]  ;;  %v1557_v44 = vld [vmem:[%s1938_s28 + $0x18] sm:$0xff]  ;;  %v1556_v47 = vld [vmem:[%s1938_s28 + $0x10] sm:$0xff] }
 0x44f   : > { %v1566_v42 = vld [vmem:[%s1938_s28 + $0x60] sm:$0xff]  ;;  %v1565_v45 = vld [vmem:[%s1938_s28 + $0x58] sm:$0xff]  ;;  %v1564_v48 = vld [vmem:[%s1938_s28 + $0x50] sm:$0xff] }
 0x450   : > { %1116 = vmatpush.bf16.msra.mxu0 %v1560_v35  ;;  %v1574_v43 = vld [vmem:[%s1938_s28 + $0xa0] sm:$0xff]  ;;  %v1573_v46 = vld [vmem:[%s1938_s28 + $0x98] sm:$0xff]  ;;  %v1572_v49 = vld [vmem:[%s1938_s28 + $0x90] sm:$0xff] }
 0x451   : > { %1129 = vmatpush.bf16.msra.mxu1 %v1568_v36  ;;  %v1555_v50 = vld [vmem:[%s1938_s28 + $0x8] sm:$0xff]  ;;  %v1554_v53 = vld [vmem:[%s1938_s28] sm:$0xff] }
 0x452   : > { %1142 = vmatpush.bf16.msra.mxu2 %v1576_v37  ;;  %v1563_v51 = vld [vmem:[%s1938_s28 + $0x48] sm:$0xff]  ;;  %v1562_v54 = vld [vmem:[%s1938_s28 + $0x40] sm:$0xff] }
 0x453   : > { %v1571_v52 = vld [vmem:[%s1938_s28 + $0x88] sm:$0xff]  ;;  %v1570_v55 = vld [vmem:[%s1938_s28 + $0x80] sm:$0xff] }
 0x454   : > { %1117 = vmatpush.bf16.msra.mxu0 %v1559_v38 }
 0x455   : > { %1130 = vmatpush.bf16.msra.mxu1 %v1567_v39 }
 0x456   : > { %1143 = vmatpush.bf16.msra.mxu2 %v1575_v40 }
 0x458   : > { %1118 = vmatpush.bf16.msra.mxu0 %v1558_v41 }
 0x459   : > { %1131 = vmatpush.bf16.msra.mxu1 %v1566_v42 }
 0x45a   : > { %1144 = vmatpush.bf16.msra.mxu2 %v1574_v43 }
 0x45c   : > { %1119 = vmatpush.bf16.msra.mxu0 %v1557_v44 }
 0x45d   : > { %1132 = vmatpush.bf16.msra.mxu1 %v1565_v45 }
 0x45e   : > { %1145 = vmatpush.bf16.msra.mxu2 %v1573_v46 }
 0x460   : > { %1120 = vmatpush.bf16.msra.mxu0 %v1556_v47 }
 0x461   : > { %1133 = vmatpush.bf16.msra.mxu1 %v1564_v48 }
 0x462   : > { %1146 = vmatpush.bf16.msra.mxu2 %v1572_v49 }
 0x464   : > { %1121 = vmatpush.bf16.msra.mxu0 %v1555_v50 }
 0x465   : > { %1134 = vmatpush.bf16.msra.mxu1 %v1563_v51 }
 0x466   : > { %1147 = vmatpush.bf16.msra.mxu2 %v1571_v52 }
 0x468   : > { %1122 = vmatpush.bf16.msra.mxu0 %v1554_v53 }
 0x469   : > { %1135 = vmatpush.bf16.msra.mxu1 %v1562_v54 }
 0x46a   : > { %1148 = vmatpush.bf16.msra.mxu2 %v1570_v55 }
 0x46b   : > { %1123 = vmatmul.bf16.vlgmr.msra.gmra.mxu0 %v917_v56 }
 0x46c   : > { %1136 = vmatmul.bf16.vlgmr.msra.gmra.mxu1 %v918_v57 }
 0x46d   : > { %1149 = vmatmul.bf16.vlgmr.msra.gmra.mxu2 %v919_v58 }
 0x4e8   : > { %v1124_v59 = vpop.f32.mrf.mxu0 }
 0x4e9   : > { %v1137_v60 = vpop.f32.mrf.mxu1 }
 0x4ea   : > { %v1138_v61 = vadd.f32 %v1137_v60, %v1124_v59 }
 0x4f0   : > { %v1150_v63 = vpop.f32.mrf.mxu2  ;;  %v1126_v1 = vpop.f32.mrf.mxu0 }
 0x4f1   : > { %v1151_v0 = vadd.f32 %v1150_v63, %v1138_v61  ;;  %v1139_v2 = vpop.f32.mrf.mxu1 }
 0x4f3   : > { %v1154_v3 = vadd.f32 %v1151_v0, %v916_v62 }
 0x4f4   : > { %1160 = sbr.rel (%p1506_p7) target bundleno = 1417 (0x589), region = 80 }
 0x4f5   : > { %1156 = vst.msk [vmem:[#allocation2] sm:$0x3] %vm1155_vm15, %v1154_v3 }
 0x4f8   : > { %v1152_v4 = vpop.f32.mrf.mxu2 }
 0x4f9   : > { %v1579_v5 = vld [vmem:[%s2000_s10 + $0x8] sm:$0xff]  ;;  %v1161_v6 = vld [vmem:[%s1999_s9] sm:$0x3]  ;;  %vm1200_vm0 = vcmask 1024  }
 0x4fa   : > { %v1163_v8 = vperm.slane %v1161_v6, 0  ;;  %1193 = vmatpush.bf16.msra.mxu0 %v1579_v5  ;;  %v1578_v9 = vld [vmem:[%s2000_s10] sm:$0xff]  ;;  %v1171_v13 = vperm.slane %v1161_v6, 1 }
 0x4fc   : > { %v1162_v7 = vld [vmem:[#allocation2] sm:$0x3] }
 0x4fd   : > { %v1164_v10 = vadd.f32 %v1163_v8, %v1162_v7 }
 0x4fe   : > { %1194 = vmatpush.bf16.msra.mxu0 %v1578_v9 }
 0x4ff   : > { %v1165_v11 = vmax.f32 %v1164_v10, 0.0 }
 0x501   : > { %v1166_v12 = vpack.c.bf16 %v1165_v11, %v1165_v11 }
 0x503   : > { %1515 = vmatmul.msk.bf16.vlgmr.msra.gmra.mxu0 %vm583_vm7, %v1166_v12 }
 0x580   : > { %v1196_v14 = vpop.f32.mrf.mxu0 }
 0x581   : > { %v1197_v15 = vadd.f32 %v1196_v14, %v1171_v13 }
 0x583   : > { %1201 = vst.msk [vmem:[%s2001_s11] sm:$0x3] %vm1200_vm0, %v1197_v15 }
 0x588   : > { %v1198_v16 = vpop.f32.mrf.mxu0 }
 0x589 PF: > { %s23_s17 = sadd.s32 1, %s1705_s17  }
 0x58a   : > { %p20_p8 = scmp.ge.s32.totalorder %s23_s17, 6  }
 0x58c   :  { %22 = sbr.rel (!%p20_p8) target bundleno = 2 (0x2), region = 111 }
 0x591   :  { %1213 = vsyncpa [#allocation4], 1 }
 0x592   :  { %1215 = vsyncpa [#allocation4 + $0x1], 1 }
 0x593   :  { %1216 = vsyncpa [#allocation6], 1 }

</bundles_post_ra>
